<compile_context>
chip_gen: v6e
topology: v6e:2x2x1
jax: 0.10.0
libtpu: 0.0.40
codegen_flags: <defaults>
</compile_context>

<pallas_src>
import functools

import jax
import jax.numpy as jnp
import numpy as np
from jax import lax
from jax.experimental import pallas as pl
from jax.experimental.pallas import tpu as pltpu


def _mvce_kernel(logits_ref, labels_ref, part_ref, acc_ref, *,
                 n_rows: int, n_classes: int, tm: int, tiles_per_part: int,
                 smoothing: float):
    """One [tm, C] row-tile of label-smoothed CE, accumulated per partition."""
    p = pl.program_id(0)   # partition (parallel across TensorCores)
    j = pl.program_id(1)   # row-tile within partition (reduction, "arbitrary")

    @pl.when(j == 0)
    def _():
        acc_ref[...] = jnp.zeros_like(acc_ref)

    # True (unclamped) global tile index -> global row ids of this tile.
    tile_idx = p * tiles_per_part + j
    row = tile_idx * tm + lax.broadcasted_iota(jnp.int32, (tm, 1), 0)
    row_valid = row < n_rows

    # Mask invalid rows BEFORE exp/log: the partial final tile (and any clamped
    # overshoot tile) holds unspecified data in those rows.
    z = jnp.where(row_valid, logits_ref[...].astype(jnp.float32), 0.0)   # [tm, C]
    y = labels_ref[...]                                                   # [tm, 1]

    # Numerically stable log-sum-exp over the full (unpadded) class dim.
    m = jnp.max(z, axis=-1, keepdims=True)
    lse = m + jnp.log(jnp.sum(jnp.exp(z - m), axis=-1, keepdims=True))    # [tm, 1]

    # Fused smoothed-target weighted sum: q_c = eps/C + (1-eps)*1[c==y].
    col = lax.broadcasted_iota(jnp.int32, z.shape, 1)
    w = (smoothing / n_classes) + (1.0 - smoothing) * (col == y).astype(jnp.float32)
    wz = jnp.sum(w * z, axis=-1, keepdims=True)                           # [tm, 1]

    acc_ref[...] += jnp.where(row_valid, lse - wz, 0.0)

    @pl.when(j == pl.num_programs(1) - 1)
    def _():
        part_ref[...] = jnp.broadcast_to(jnp.sum(acc_ref[...]), part_ref.shape)


def multiview_cross_entropy(logits, labels, *, mode: str = 'all',
                            smoothing: float = 0.1):
    """JAX/Pallas equivalent of MultiviewCrossEntropy.forward (mean reduction)."""
    B, V, C = logits.shape
    if mode == 'all':
        z = logits.reshape(B * V, C)                       # contiguous reshape, no copy
        y = jnp.repeat(labels.astype(jnp.int32), V)        # label per (b, v) row
    elif mode == 'one':
        # TODO(synk): index view 0 through a Squeezed middle-dim BlockSpec on the
        # 3-D logits to avoid materializing this [B, C] slice in HBM.
        z = logits[:, 0, :]
        y = labels.astype(jnp.int32)
    else:
        raise ValueError(f'Invalid mode: {mode}')

    M = z.shape[0]

    # Row tile: ~2 MiB of f32 work per block (good HBM utilization, VMEM-safe
    # on v7x even with the in-kernel f32 temporaries).
    # TODO(synk): for very large vocabularies (C >> 8k) add a class-chunk grid
    # axis with an online-LSE accumulator to bound VMEM independent of C.
    tm = (2 * 1024 * 1024) // max(1, C * 4)
    tm = max(8, (tm // 8) * 8)
    tm = min(tm, 2048)
    if tm >= M:
        tm = M                                             # single full-rows tile

    num_tiles = -(-M // tm)
    num_parts = 2 if num_tiles >= 2 else 1                 # both TCs on v7x; harmless on 1-TC chips
    tiles_per_part = -(-num_tiles // num_parts)

    # Labels as a lane-1 int32 column, padded so every grid tile is in range.
    m_pad = num_parts * tiles_per_part * tm
    y_col = jnp.zeros((m_pad, 1), jnp.int32).at[:M, 0].set(y)

    def logits_index_map(p, j):
        t = p * tiles_per_part + j
        return (jnp.minimum(t, num_tiles - 1), 0)          # clamp overshoot tiles (masked in-kernel)

    def labels_index_map(p, j):
        return (p * tiles_per_part + j, 0)

    est_vmem = 2 * tm * C * z.dtype.itemsize + 8 * tm * C * 4 + (1 << 20)
    vmem_limit = int(min(max(est_vmem, 32 << 20), 48 << 20))

    kernel = functools.partial(
        _mvce_kernel, n_rows=M, n_classes=C, tm=tm,
        tiles_per_part=tiles_per_part, smoothing=float(smoothing))

    out = pl.pallas_call(
        kernel,
        out_shape=jax.ShapeDtypeStruct((num_parts, 8, 128), jnp.float32),
        grid_spec=pltpu.PrefetchScalarGridSpec(
            num_scalar_prefetch=0,
            grid=(num_parts, tiles_per_part),
            in_specs=[pl.BlockSpec((tm, C), logits_index_map),
                      pl.BlockSpec((tm, 1), labels_index_map)],
            out_specs=pl.BlockSpec((None, 8, 128), lambda p, j: (p, 0, 0)),
            scratch_shapes=[pltpu.VMEM((tm, 1), jnp.float32)],
        ),
        compiler_params=pltpu.CompilerParams(
            dimension_semantics=("parallel", "arbitrary"),
            vmem_limit_bytes=vmem_limit),
    )(z, y_col)

    return jnp.sum(out[:, 0, 0]) / jnp.float32(M)


def _reference(logits, labels, mode='all', smoothing=0.1):
    """Pure-JAX reference mirroring torch.nn.CrossEntropyLoss(label_smoothing=0.1)."""
    B, V, C = logits.shape
    if mode == 'all':
        z = logits.reshape(B * V, C)
        y = jnp.repeat(labels.astype(jnp.int32), V)
    else:
        z = logits[:, 0, :]
        y = labels.astype(jnp.int32)
    logp = jax.nn.log_softmax(z.astype(jnp.float32), axis=-1)
    nll = -jnp.take_along_axis(logp, y[:, None], axis=1)[:, 0]
    smooth = -jnp.mean(logp, axis=-1)
    return jnp.mean((1.0 - smoothing) * nll + smoothing * smooth)


if __name__ == "__main__":
    B, V, C = 4, 3, 10

    key = jax.random.PRNGKey(0)
    kl, ky = jax.random.split(key)
    logits = jax.random.normal(kl, (B, V, C), dtype=jnp.float32)
    labels = jax.random.randint(ky, (B,), 0, C, dtype=jnp.int32)

    # mode='all'
    loss_all = jax.block_until_ready(
        multiview_cross_entropy(logits, labels, mode='all'))
    ref_all = jax.block_until_ready(_reference(logits, labels, mode='all'))
    np.testing.assert_allclose(np.asarray(loss_all), np.asarray(ref_all),
                               rtol=1e-5, atol=1e-6)

    # mode='one'
    loss_one = jax.block_until_ready(
        multiview_cross_entropy(logits, labels, mode='one'))
    ref_one = jax.block_until_ready(_reference(logits, labels, mode='one'))
    np.testing.assert_allclose(np.asarray(loss_one), np.asarray(ref_one),
                               rtol=1e-5, atol=1e-6)

    assert np.isfinite(float(loss_all)) and np.isfinite(float(loss_one))
    print("KERNEL_OK")
</pallas_src>

<mosaic_0001>
module attributes {stable_mosaic.version = 11 : i64} {
  func.func @_mvce_kernel(%arg0: i32, %arg1: i32, %arg2: memref<12x10xf32, #tpu.memory_space<vmem>>, %arg3: memref<12x1xi32, #tpu.memory_space<vmem>>, %arg4: memref<1x8x128xf32, #tpu.memory_space<vmem>>, %arg5: memref<12x1xf32, #tpu.memory_space<vmem>>) attributes {dimension_semantics = [#tpu.dimension_semantics<parallel>, #tpu.dimension_semantics<arbitrary>], iteration_bounds = array<i64: 1, 1>, scalar_prefetch = 0 : i64, scratch_operands = 1 : i64, tpu.core_type = #tpu.core_type<tc>, window_params = [{transform_indices = @transform_0, window_bounds = array<i64: 12, 10>}, {transform_indices = @transform_1, window_bounds = array<i64: 12, 1>}, {transform_indices = @transform_2, window_bounds = array<i64: 1, 8, 128>}]} {
    %c0_i32 = arith.constant 0 : i32
    %0 = arith.cmpi eq, %arg1, %c0_i32 : i32
    %1 = arith.extui %0 : i1 to i32
    %c0_i32_0 = arith.constant 0 : i32
    %2 = arith.cmpi ne, %1, %c0_i32_0 : i32
    scf.if %2 {
      %cst_17 = arith.constant 0.000000e+00 : f32
      %47 = vector.broadcast %cst_17 : f32 to vector<12x1xf32>
      %c0_18 = arith.constant 0 : index
      %c0_19 = arith.constant 0 : index
      %48 = vector.load %arg5[%c0_18, %c0_19] : memref<12x1xf32, #tpu.memory_space<vmem>>, vector<12x1xf32>
      tpu.vector_store %arg5[%c0_18, %c0_19], %47 {strides = array<i32>} : memref<12x1xf32, #tpu.memory_space<vmem>>, vector<12x1xf32>,
    } else {
    }
    %c1_i32 = arith.constant 1 : i32
    %3 = arith.muli %arg0, %c1_i32 : i32
    %4 = arith.addi %3, %arg1 : i32
    %c12_i32 = arith.constant 12 : i32
    %5 = arith.muli %4, %c12_i32 : i32
    %6 = tpu.iota {dimensions = array<i32: 0>} : vector<12x1xi32>
    %7 = vector.broadcast %5 : i32 to vector<12x1xi32>
    %8 = arith.addi %7, %6 : vector<12x1xi32>
    %c12_i32_1 = arith.constant 12 : i32
    %9 = vector.broadcast %c12_i32_1 : i32 to vector<12x1xi32>
    %10 = arith.cmpi slt, %8, %9 : vector<12x1xi32>
    %c0 = arith.constant 0 : index
    %c0_2 = arith.constant 0 : index
    %11 = vector.load %arg2[%c0, %c0_2] : memref<12x10xf32, #tpu.memory_space<vmem>>, vector<12x10xf32>
    %cst = arith.constant 0.000000e+00 : f32
    %12 = vector.shape_cast %10 : vector<12x1xi1> to vector<12x1xi1>
    %13 = vector.broadcast %12 : vector<12x1xi1> to vector<12x10xi1>
    %14 = vector.broadcast %cst : f32 to vector<12x10xf32>
    %15 = arith.select %13, %11, %14 : vector<12x10xi1>, vector<12x10xf32>
    %c0_3 = arith.constant 0 : index
    %c0_4 = arith.constant 0 : index
    %16 = vector.load %arg3[%c0_3, %c0_4] : memref<12x1xi32, #tpu.memory_space<vmem>>, vector<12x1xi32>
    %cst_5 = arith.constant dense<0xFF800000> : vector<12xf32>
    %17 = vector.multi_reduction <maximumf>, %15, %cst_5 [1] : vector<12x10xf32> to vector<12xf32>
    %18 = vector.shape_cast %17 : vector<12xf32> to vector<12x1xf32>
    %19 = vector.broadcast %18 : vector<12x1xf32> to vector<12x10xf32>
    %20 = arith.subf %15, %19 : vector<12x10xf32>
    %21 = math.exp %20 : vector<12x10xf32>
    %cst_6 = arith.constant dense<0.000000e+00> : vector<12xf32>
    %22 = vector.multi_reduction <add>, %21, %cst_6 [1] : vector<12x10xf32> to vector<12xf32>
    %23 = vector.shape_cast %22 : vector<12xf32> to vector<12x1xf32>
    %24 = math.log %23 : vector<12x1xf32>
    %25 = arith.addf %18, %24 : vector<12x1xf32>
    %26 = tpu.iota {dimensions = array<i32: 1>} : vector<12x10xi32>
    %27 = vector.broadcast %16 : vector<12x1xi32> to vector<12x10xi32>
    %28 = arith.cmpi eq, %26, %27 : vector<12x10xi32>
    %29 = arith.extui %28 : vector<12x10xi1> to vector<12x10xi32>
    %30 = arith.sitofp %29 : vector<12x10xi32> to vector<12x10xf32>
    %cst_7 = arith.constant 0.899999976 : f32
    %31 = vector.broadcast %cst_7 : f32 to vector<12x10xf32>
    %32 = arith.mulf %31, %30 : vector<12x10xf32>
    %cst_8 = arith.constant 0.00999999977 : f32
    %33 = vector.broadcast %cst_8 : f32 to vector<12x10xf32>
    %34 = arith.addf %33, %32 : vector<12x10xf32>
    %35 = arith.mulf %34, %15 : vector<12x10xf32>
    %cst_9 = arith.constant dense<0.000000e+00> : vector<12xf32>
    %36 = vector.multi_reduction <add>, %35, %cst_9 [1] : vector<12x10xf32> to vector<12xf32>
    %37 = vector.shape_cast %36 : vector<12xf32> to vector<12x1xf32>
    %c0_10 = arith.constant 0 : index
    %c0_11 = arith.constant 0 : index
    %38 = vector.load %arg5[%c0_10, %c0_11] : memref<12x1xf32, #tpu.memory_space<vmem>>, vector<12x1xf32>
    %39 = arith.subf %25, %37 : vector<12x1xf32>
    %cst_12 = arith.constant 0.000000e+00 : f32
    %40 = vector.broadcast %cst_12 : f32 to vector<12x1xf32>
    %41 = arith.select %10, %39, %40 : vector<12x1xi1>, vector<12x1xf32>
    %42 = arith.addf %38, %41 : vector<12x1xf32>
    %c0_13 = arith.constant 0 : index
    %c0_14 = arith.constant 0 : index
    %43 = vector.load %arg5[%c0_13, %c0_14] : memref<12x1xf32, #tpu.memory_space<vmem>>, vector<12x1xf32>
    tpu.vector_store %arg5[%c0_13, %c0_14], %42 {strides = array<i32>} : memref<12x1xf32, #tpu.memory_space<vmem>>, vector<12x1xf32>,
    %c0_i32_15 = arith.constant 0 : i32
    %44 = arith.cmpi eq, %arg1, %c0_i32_15 : i32
    %45 = arith.extui %44 : i1 to i32
    %c0_i32_16 = arith.constant 0 : i32
    %46 = arith.cmpi ne, %45, %c0_i32_16 : i32
    scf.if %46 {
      %c0_17 = arith.constant 0 : index
      %c0_18 = arith.constant 0 : index
      %47 = vector.load %arg5[%c0_17, %c0_18] : memref<12x1xf32, #tpu.memory_space<vmem>>, vector<12x1xf32>
      %48 = vector.shape_cast %47 : vector<12x1xf32> to vector<1x12x1xf32>
      %cst_19 = arith.constant dense<0.000000e+00> : vector<1xf32>
      %49 = vector.multi_reduction <add>, %48, %cst_19 [1, 2] : vector<1x12x1xf32> to vector<1xf32>
      %50 = vector.shape_cast %49 : vector<1xf32> to vector<1x1x1xf32>
      %51 = vector.extract %50[0, 0, 0] : f32 from vector<1x1x1xf32>
      %52 = vector.broadcast %51 : f32 to vector<8x128xf32>
      %c0_20 = arith.constant 0 : index
      %c0_21 = arith.constant 0 : index
      %c0_22 = arith.constant 0 : index
      %53 = vector.load %arg4[%c0_20, %c0_21, %c0_22] : memref<1x8x128xf32, #tpu.memory_space<vmem>>, vector<1x8x128xf32>
      %54 = vector.shape_cast %53 : vector<1x8x128xf32> to vector<8x128xf32>
      %55 = vector.shape_cast %52 : vector<8x128xf32> to vector<1x8x128xf32>
      tpu.vector_store %arg4[%c0_20, %c0_21, %c0_22], %55 {strides = array<i32>} : memref<1x8x128xf32, #tpu.memory_space<vmem>>, vector<1x8x128xf32>,
    } else {
    }
    return
  }
  func.func @transform_0(%arg0: i32, %arg1: i32) -> (i32, i32) {
    %c1_i32 = arith.constant 1 : i32
    %0 = arith.muli %arg0, %c1_i32 : i32
    %1 = arith.addi %0, %arg1 : i32
    %c0_i32 = arith.constant 0 : i32
    %2 = arith.minsi %1, %c0_i32 : i32
    %c0_i32_0 = arith.constant 0 : i32
    %c0_i32_1 = arith.constant 0 : i32
    return %2, %c0_i32_0 : i32, i32
  }
  func.func @transform_1(%arg0: i32, %arg1: i32) -> (i32, i32) {
    %c1_i32 = arith.constant 1 : i32
    %0 = arith.muli %arg0, %c1_i32 : i32
    %1 = arith.addi %0, %arg1 : i32
    %c0_i32 = arith.constant 0 : i32
    %c0_i32_0 = arith.constant 0 : i32
    return %1, %c0_i32 : i32, i32
  }
  func.func @transform_2(%arg0: i32, %arg1: i32) -> (i32, i32, i32) {
    %c0_i32 = arith.constant 0 : i32
    %c0_i32_0 = arith.constant 0 : i32
    %c0_i32_1 = arith.constant 0 : i32
    return %arg0, %c0_i32, %c0_i32_0 : i32, i32, i32
  }
}

</mosaic_0001>

<bundles_post_ra>
// kernel: tpu_custom_call.1
= control target key start
LH: loop header
LB: loop body
LE: loop exit
PB: predicated region body
PF: predicated region fallthrough
CT: control target
= control target key end

     0   :  { %v76_v0 = vlaneseq  ;;  %v242_v1 = vmov 0   ;;  %s289_s0 = inlined_call_operand.vmem [shape: f32[12,10], index: 0, kind: input, shape index: {}]   ;;  %s290_s1 = inlined_call_operand.vmem [shape: s32[12,1], index: 1, kind: input, shape index: {}]   ;;  %s291_s2 = inlined_call_operand.hbm [shape: f32[1,8,128], index: 2, kind: output, shape index: {}]  }
   0x1   :  { %210 = vset.pattern.permute.xlu1 %v242_v1  ;;  %v93_v2 = vld [vmem:[%s290_s1 + $0x8] sm:$0xf]  ;;  %211 = vset.pattern.permute.xlu0 %v242_v1 }
   0x2   :  { %7 = vsyncpa [#allocation4], 0  ;;  %v77_v3 = vshrl.u32 %v76_v0, 7  ;;  %126 = vperm.xlu1 %210, %v93_v2   ;;  %v92_v4 = vld [vmem:[%s290_s1] sm:$0xff]  ;;  %v85_v6 = vld [vmem:[%s289_s0 + $0x8] sm:$0xf] }
   0x3   :  { %vm98_vm0 = vcmask 76800   ;;  %v84_v8 = vld [vmem:[%s289_s0] sm:$0xff]  ;;  %vm94_vm2 = vcmask 80896   ;;  %v121_v12 = vand.u32 127, %v76_v0  ;;  %v243_v19 = vmov 0.0   ;;  %s244_s0 = smov [#allocation3]  }
   0x4   :  { %v78_v5 = vadd.s32 8, %v77_v3  ;;  %v95_v10 = vsel %vm94_vm2, %v84_v8, -inf  ;;  %vm72_vm5 = vcmask 3072   ;;  %vm70_vm6 = vcmask 7168   ;;  %s183_s1 = sshll.u32 %s244_s0, 4  ;;  %s184_s1 = int_to_ptr.vmem [resolvable:$true] %s183_s1 }
   0x5   :  { %73 = vst.msk [vmem:[#allocation2 + $0x8] sm:$0xf] %vm72_vm5, %v243_v19  ;;  %s220_s18 = scalar_lea.vmem %s184_s1, 128  ;;  %p225_p1 = scmp.lt.s32.totalorder %s184_s1, %s184_s1 }
   0x6   :  { %vm83_vm1 = vcmp.lt.s32.totalorder %v78_v5, 12  ;;  %123 = vperm.xlu1 %210, %v92_v4   ;;  %71 = vst.msk [vmem:[#allocation2] sm:$0xff] %vm70_vm6, %v243_v19  ;;  %p221_p0 = scmp.ne.s32.totalorder %s184_s1, %s220_s18  ;;  %p226_p2 = scmp.lt.s32.totalorder %s220_s18, %s220_s18 }
   0x7   :  { %v91_v7 = vsel %vm83_vm1, %v85_v6, 0.0 }
   0x8   :  { %v99_v9 = vsel %vm98_vm0, %v91_v7, -inf  ;;  %p227_p3 = por %p226_p2, %p225_p1 }
   0x9   :  { %100 = vmax.xlane.f32.xlu0 %v99_v9 }
   0xa   :  { %p228_p4 = pnand %p227_p3, %p221_p0 }
   0xc   :  { %v147_v43 = vld [vmem:[#allocation2 + $0x8] sm:$0xf] }
   0xd   :  { %96 = vmax.xlane.f32.xlu0 %v95_v10  ;;  %v146_v49 = vld [vmem:[#allocation2] sm:$0xff] }
  0x7d   :  { %v127_v11 = vpop.permute.xlu1 %126 }
  0x7e   :  { %vm129_vm3 = vcmp.eq.s32.totalorder %v121_v12, %v127_v11 }
  0x7f   :  { %v204_v20 = vsel %vm129_vm3, 1.0, %v243_v19 }
  0x80   :  { %v135_v22 = vmul.f32 0.9, %v204_v20 }
  0x81   :  { %v124_v17 = vpop.permute.xlu1 %123 }
  0x82   :  { %vm128_vm4 = vcmp.eq.s32.totalorder %v121_v12, %v124_v17  ;;  %v137_v24 = vadd.f32 0.01, %v135_v22 }
  0x83   :  { %v203_v23 = vsel %vm128_vm4, 1.0, %v243_v19 }
  0x84   :  { %v134_v25 = vmul.f32 0.9, %v203_v23  ;;  %v139_v27 = vmul.f32 %v137_v24, %v91_v7 }
  0x86   :  { %v136_v26 = vadd.f32 0.01, %v134_v25  ;;  %v143_v30 = vsel %vm98_vm0, %v139_v27, 0.0 }
  0x88   :  { %v138_v31 = vmul.f32 %v136_v26, %v84_v8 }
  0x8a   :  { %v140_v34 = vsel %vm94_vm2, %v138_v31, 0.0 }
  0x92   :  { %v101_v13 = vpop.xlane.xlu0 %100 }
  0x93   :  { %v103_v14 = vsub.f32 %v91_v7, %v101_v13 }
  0x95   :  { %v106_v15 = vmul.f32 1.442695, %v103_v14 }
  0x96   :  { %v97_v16 = vpop.xlane.xlu0 %96 }
  0x97   :  { %212 = vpow2.f32 %v106_v15  ;;  %v102_v18 = vsub.f32 %v84_v8, %v97_v16 }
  0x99   :  { %v104_v21 = vmul.f32 1.442695, %v102_v18 }
  0x9b   :  { %214 = vpow2.f32 %v104_v21 }
  0xa4   :  { %v213_v28 = vpop.eup %212 }
  0xa5   :  { %v111_v29 = vsel %vm98_vm0, %v213_v28, 0.0 }
  0xa6   :  { %112 = vadd.xlane.f32.xlu0 %v111_v29 }
  0xa8   :  { %v215_v32 = vpop.eup %214 }
  0xa9   :  { %v108_v33 = vsel %vm94_vm2, %v215_v32, 0.0 }
  0xaa   :  { %109 = vadd.xlane.f32.xlu1 %v108_v33  ;;  %144 = vadd.xlane.f32.xlu0 %v143_v30 }
  0xae   :  { %141 = vadd.xlane.f32.xlu0 %v140_v34 }
 0x12f   :  { %v113_v35 = vpop.xlane.xlu0 %112 }
 0x130   :  { %216 = vlog2.f32 %v113_v35 }
 0x133   :  { %v110_v36 = vpop.xlane.xlu1 %109  ;;  %v145_v39 = vpop.xlane.xlu0 %144 }
 0x134   :  { %218 = vlog2.f32 %v110_v36 }
 0x137   :  { %v142_v48 = vpop.xlane.xlu0 %141 }
 0x13d   :  { %v217_v37 = vpop.eup %216 }
 0x13e   :  { %v117_v38 = vmul.f32 0.6931472, %v217_v37 }
 0x140   :  { %v119_v40 = vadd.f32 %v117_v38, %v101_v13 }
 0x141   :  { %v219_v41 = vpop.eup %218 }
 0x142   :  { %v115_v42 = vmul.f32 0.6931472, %v219_v41  ;;  %v149_v44 = vsub.f32 %v119_v40, %v145_v39 }
 0x144   :  { %v151_v45 = vsel %vm83_vm1, %v149_v44, 0.0  ;;  %v118_v46 = vadd.f32 %v115_v42, %v97_v16 }
 0x145   :  { %v153_v47 = vadd.f32 %v151_v45, %v147_v43 }
 0x146   :  { %v148_v50 = vsub.f32 %v118_v46, %v142_v48 }
 0x147   :  { %157 = vst.msk [vmem:[#allocation2 + $0x8] sm:$0xf] %vm72_vm5, %v153_v47 }
 0x148   :  { %v152_v51 = vadd.f32 %v148_v50, %v146_v49 }
 0x14a   :  { %155 = vst.msk [vmem:[#allocation2] sm:$0xff] %vm70_vm6, %v152_v51 }
 0x14e   :  { %v162_v52 = vld [vmem:[#allocation2 + $0x8] sm:$0xf] }
 0x14f   :  { %v164_v55 = vsel %vm72_vm5, %v162_v52, 0.0 }
 0x151   :  { %v161_v53 = vld [vmem:[#allocation2] sm:$0xff] }
 0x152   :  { %v163_v54 = vsel %vm70_vm6, %v161_v53, 0.0 }
 0x153   :  { %v165_v56 = vadd.f32 %v164_v55, %v163_v54 }
 0x155   :  { %166 = vadd.xlane.f32.xlu0 %v165_v56 }
 0x1de   :  { %v167_v57 = vpop.xlane.xlu0 %166 }
 0x1df   :  { %v168_v58 = vrot.slane %v167_v57, 4 }
 0x1e1   :  { %v169_v59 = vadd.f32 %v168_v58, %v167_v57 }
 0x1e3   :  { %v170_v60 = vrot.slane %v169_v59, 2 }
 0x1e5   :  { %v171_v61 = vadd.f32 %v170_v60, %v169_v59 }
 0x1e7   :  { %v172_v62 = vrot.slane %v171_v61, 1 }
 0x1e9   :  { %v173_v63 = vadd.f32 %v172_v62, %v171_v61 }
 0x1eb   :  { %205 = vpush %v173_v63 }
 0x21c   :  { %s206_s17 = spop %205 }
 0x21d   :  { %v175_v0 = vstv %s206_s17 }
 0x21e   :  { %176 = vst [vmem:[#allocation3] sm:$0xff] %v175_v0 }
 0x21f   :  { %231 = shalt.err (!%p228_p4)
}
 0x220   :  { %186 = dma.vmem_to_hbm [thread:$0]  %s184_s1, 128, %s291_s2, [#allocation4]  }
 0x221   :  { %240 = dma.done.wait [#allocation4], 128  }
 0x222   :  { %241 = vsyncadd [#allocation4], 4294967168 }
 0x223   :  { %190 = vsyncpa [#allocation4], 1 }

</bundles_post_ra>
